<compile_context>
chip_gen: v7x
topology: tpu7x:2x2x1
jax: 0.10.0
libtpu: 0.0.40
codegen_flags: <defaults>
</compile_context>

<pallas_src>
import math
import jax
import jax.numpy as jnp
from jax import lax
from jax.experimental import pallas as pl
from jax.experimental.pallas import tpu as pltpu

BN_EPS = 1e-5
LANES = 128
SUBLANES = 8
VMEM_LIMIT_BYTES = 32 * 1024 * 1024     # v7x-safe scoped VMEM limit
VMEM_TILE_BUDGET = 24 * 1024 * 1024     # keep per-step working set well under the limit


def _round_up(x, m):
    return ((x + m - 1) // m) * m


def _pick_tile_m(m, k, c_pad):
    """Largest power-of-two row tile (<=256 baseline) whose double-buffered
    working set fits the v7x VMEM budget."""
    def step_bytes(tm):
        # 2x bf16 patch tiles + resident bf16 weights + 2x f32 y tiles + 2x stats tiles
        return (2 * tm * k * 2) + (k * c_pad * 2) + (4 * tm * c_pad * 4) \
               + (2 * SUBLANES * c_pad * 4)
    tile_m = 256
    while tile_m > SUBLANES and step_bytes(tile_m) > VMEM_TILE_BUDGET:
        tile_m //= 2
    return max(SUBLANES, min(tile_m, _round_up(m, SUBLANES)))


def _matmul_stats_kernel(p_ref, w_ref, y_ref, stats_ref):
    # p_ref:    (tile_m, K)        bf16 im2col patches tile
    # w_ref:    (K, C_pad)         bf16 conv weights (same block every iteration)
    # y_ref:    (tile_m, C_pad)    f32 conv output tile
    # stats_ref:(1, 8, C_pad)      f32; row 0 = per-channel sum, row 1 = sum of squares
    y = jnp.dot(p_ref[...], w_ref[...], preferred_element_type=jnp.float32)
    y_ref[...] = y

    s = jnp.sum(y, axis=0, keepdims=True)        # (1, C_pad)
    sq = jnp.sum(y * y, axis=0, keepdims=True)   # (1, C_pad)
    row = lax.broadcasted_iota(jnp.int32, (SUBLANES, y.shape[1]), 0)
    stats_ref[0] = jnp.where(row == 0, s, jnp.where(row == 1, sq, 0.0))


def _bn_gelu_kernel(y_ref, scale_ref, bias_ref, o_ref):
    # Folded BN: one per-channel FMA, then exact (erf) GELU.
    z = y_ref[...] * scale_ref[...] + bias_ref[...]
    o_ref[...] = 0.5 * z * (1.0 + lax.erf(z * 0.7071067811865476))


def _im2col_nhwc(x_nhwc, kh, kw, stride, padding):
    """x_nhwc: (N, H, W, Cin) -> patches (N*OH*OW, KH*KW*Cin), kh/kw outer, Cin inner."""
    x = jnp.pad(x_nhwc, ((0, 0), (padding, padding), (padding, padding), (0, 0)))
    n, hp, wp, c = x.shape
    oh = (hp - kh) // stride + 1
    ow = (wp - kw) // stride + 1
    cols = []
    for i in range(kh):
        for j in range(kw):
            cols.append(x[:, i:i + stride * oh:stride, j:j + stride * ow:stride, :])
    p = jnp.stack(cols, axis=3)                      # (N, OH, OW, KH*KW, Cin)
    return p.reshape(n * oh * ow, kh * kw * c), oh, ow


def conv_bn_act(x_nchw, conv_w, gamma, beta, stride=1, padding=0):
    """Forward pass of ConvBNACT.

    x_nchw : (N, Cin, H, W) float32
    conv_w : (Cout, Cin, KH, KW) float32   (nn.Conv2d weight, bias=False)
    gamma  : (Cout,) float32               (BatchNorm2d weight)
    beta   : (Cout,) float32               (BatchNorm2d bias)
    returns: (N, Cout, OH, OW) float32
    """
    n, cin, h, w = x_nchw.shape
    cout, cin_w, kh, kw = conv_w.shape
    assert cin == cin_w

    x_nhwc = jnp.transpose(x_nchw, (0, 2, 3, 1))
    patches, oh, ow = _im2col_nhwc(x_nhwc, kh, kw, stride, padding)   # (M, K) f32
    m, kdim = patches.shape

    c_pad = _round_up(cout, LANES)
    tile_m = _pick_tile_m(m, kdim, c_pad)
    m_pad = _round_up(m, tile_m)
    num_tiles = m_pad // tile_m

    # bf16 operands for the MXU (f32 accumulation); Cout padded to a lane-dense 128.
    patches_b = jnp.pad(patches, ((0, m_pad - m), (0, 0))).astype(jnp.bfloat16)
    w_mat = jnp.transpose(conv_w, (2, 3, 1, 0)).reshape(kdim, cout)   # (K, Cout)
    w_mat = jnp.pad(w_mat, ((0, 0), (0, c_pad - cout))).astype(jnp.bfloat16)

    # ---- Pass 1: tiled matmul + fused per-tile channel sums -------------------
    y, stats = pl.pallas_call(
        _matmul_stats_kernel,
        out_shape=(
            jax.ShapeDtypeStruct((m_pad, c_pad), jnp.float32),
            jax.ShapeDtypeStruct((num_tiles, SUBLANES, c_pad), jnp.float32),
        ),
        grid=(num_tiles,),
        in_specs=[
            pl.BlockSpec((tile_m, kdim), lambda i: (i, 0)),
            pl.BlockSpec((kdim, c_pad), lambda i: (0, 0)),
        ],
        out_specs=(
            pl.BlockSpec((tile_m, c_pad), lambda i: (i, 0)),
            pl.BlockSpec((1, SUBLANES, c_pad), lambda i: (i, 0, 0)),
        ),
        compiler_params=pltpu.CompilerParams(
            dimension_semantics=("parallel",),
            vmem_limit_bytes=VMEM_LIMIT_BYTES),
    )(patches_b, w_mat)

    # ---- Finalize BN (tiny, per-channel) and fold into scale/bias -------------
    total = jnp.sum(stats[:, 0, :], axis=0)          # (C_pad,)
    total_sq = jnp.sum(stats[:, 1, :], axis=0)       # (C_pad,)
    mean = total / m                                  # exact batch mean over N*OH*OW
    var = jnp.maximum(total_sq / m - mean * mean, 0.0)   # biased var (train mode)
    g_pad = jnp.pad(gamma.astype(jnp.float32), (0, c_pad - cout))
    b_pad = jnp.pad(beta.astype(jnp.float32), (0, c_pad - cout))
    scale = (g_pad * lax.rsqrt(var + BN_EPS)).reshape(1, c_pad)
    bias = (b_pad - mean * scale[0]).reshape(1, c_pad)

    # ---- Pass 2: tiled normalize (single FMA) + exact GELU ---------------------
    out = pl.pallas_call(
        _bn_gelu_kernel,
        out_shape=jax.ShapeDtypeStruct((m_pad, c_pad), jnp.float32),
        grid=(num_tiles,),
        in_specs=[
            pl.BlockSpec((tile_m, c_pad), lambda i: (i, 0)),
            pl.BlockSpec((1, c_pad), lambda i: (0, 0)),
            pl.BlockSpec((1, c_pad), lambda i: (0, 0)),
        ],
        out_specs=pl.BlockSpec((tile_m, c_pad), lambda i: (i, 0)),
        compiler_params=pltpu.CompilerParams(
            dimension_semantics=("parallel",),
            vmem_limit_bytes=VMEM_LIMIT_BYTES),
    )(y, scale, bias)

    # strip padding: (M, Cout) -> (N, OH, OW, Cout) -> NCHW
    out = out[:m, :cout]
    return jnp.transpose(out.reshape(n, oh, ow, cout), (0, 3, 1, 2))


if __name__ == "__main__":
    # Module config: ConvBNACT(in_channels=4, out_channels=8, kernel_size=3,
    #                          stride=1, padding=1, groups=1)
    N, CIN, H, W = 2, 4, 16, 16
    COUT, KH, KW = 8, 3, 3
    STRIDE, PAD = 1, 1

    key = jax.random.PRNGKey(0)
    kx, kw_ = jax.random.split(key)

    x = jax.random.normal(kx, (N, CIN, H, W), dtype=jnp.float32)

    # Deterministic parameter init (kaiming-uniform-like bound for conv weight,
    # BatchNorm defaults gamma=1, beta=0).
    fan_in = CIN * KH * KW
    bound = 1.0 / math.sqrt(fan_in)
    conv_w = jax.random.uniform(kw_, (COUT, CIN, KH, KW),
                                dtype=jnp.float32, minval=-bound, maxval=bound)
    gamma = jnp.ones((COUT,), dtype=jnp.float32)
    beta = jnp.zeros((COUT,), dtype=jnp.float32)

    y = conv_bn_act(x, conv_w, gamma, beta, stride=STRIDE, padding=PAD)
    y = jax.block_until_ready(y)
    assert y.shape == (N, COUT, H, W), y.shape
    assert jnp.all(jnp.isfinite(y))
    print("KERNEL_OK")
</pallas_src>

<mosaic_0001>
module attributes {stable_mosaic.version = 11 : i64} {
  func.func @_matmul_stats_kernel(%arg0: i32, %arg1: memref<256x36xbf16, #tpu.memory_space<vmem>>, %arg2: memref<36x128xbf16, #tpu.memory_space<vmem>>, %arg3: memref<256x128xf32, #tpu.memory_space<vmem>>, %arg4: memref<1x8x128xf32, #tpu.memory_space<vmem>>) attributes {dimension_semantics = [#tpu.dimension_semantics<parallel>], iteration_bounds = array<i64: 2>, scalar_prefetch = 0 : i64, scratch_operands = 0 : i64, tpu.core_type = #tpu.core_type<tc>, window_params = [{transform_indices = @transform_0, window_bounds = array<i64: 256, 36>}, {pipeline_mode = #tpu.pipeline_mode<synchronous>, transform_indices = @transform_1, window_bounds = array<i64: 36, 128>}, {transform_indices = @transform_2, window_bounds = array<i64: 256, 128>}, {transform_indices = @transform_3, window_bounds = array<i64: 1, 8, 128>}]} {
    %c0 = arith.constant 0 : index
    %c0_0 = arith.constant 0 : index
    %0 = vector.load %arg1[%c0, %c0_0] : memref<256x36xbf16, #tpu.memory_space<vmem>>, vector<256x36xbf16>
    %c0_1 = arith.constant 0 : index
    %c0_2 = arith.constant 0 : index
    %1 = vector.load %arg2[%c0_1, %c0_2] : memref<36x128xbf16, #tpu.memory_space<vmem>>, vector<36x128xbf16>
    %cst = arith.constant dense<0.000000e+00> : vector<256x128xf32>
    %2 = tpu.matmul %0, %1, %cst {dimension_numbers = #tpu.dot_dimension_numbers<[1], [0], [0], [1], [0, 0, 1, 1], [], []>} : vector<256x36xbf16>, vector<36x128xbf16>, vector<256x128xf32> -> vector<256x128xf32>
    %c0_3 = arith.constant 0 : index
    %c0_4 = arith.constant 0 : index
    %3 = vector.load %arg3[%c0_3, %c0_4] : memref<256x128xf32, #tpu.memory_space<vmem>>, vector<256x128xf32>
    tpu.vector_store %arg3[%c0_3, %c0_4], %2 {strides = array<i32>} : memref<256x128xf32, #tpu.memory_space<vmem>>, vector<256x128xf32>,
    %cst_5 = arith.constant dense<0.000000e+00> : vector<128xf32>
    %4 = vector.multi_reduction <add>, %2, %cst_5 [0] : vector<256x128xf32> to vector<128xf32>
    %5 = vector.shape_cast %4 : vector<128xf32> to vector<1x128xf32>
    %6 = arith.mulf %2, %2 : vector<256x128xf32>
    %cst_6 = arith.constant dense<0.000000e+00> : vector<128xf32>
    %7 = vector.multi_reduction <add>, %6, %cst_6 [0] : vector<256x128xf32> to vector<128xf32>
    %8 = vector.shape_cast %7 : vector<128xf32> to vector<1x128xf32>
    %9 = tpu.iota {dimensions = array<i32: 0>} : vector<8x128xi32>
    %c0_i32 = arith.constant 0 : i32
    %10 = vector.broadcast %c0_i32 : i32 to vector<8x128xi32>
    %11 = arith.cmpi eq, %9, %10 : vector<8x128xi32>
    %c1_i32 = arith.constant 1 : i32
    %12 = vector.broadcast %c1_i32 : i32 to vector<8x128xi32>
    %13 = arith.cmpi eq, %9, %12 : vector<8x128xi32>
    %cst_7 = arith.constant 0.000000e+00 : f32
    %14 = vector.shape_cast %8 : vector<1x128xf32> to vector<1x128xf32>
    %15 = vector.broadcast %14 : vector<1x128xf32> to vector<8x128xf32>
    %16 = vector.broadcast %cst_7 : f32 to vector<8x128xf32>
    %17 = arith.select %13, %15, %16 : vector<8x128xi1>, vector<8x128xf32>
    %18 = vector.shape_cast %5 : vector<1x128xf32> to vector<1x128xf32>
    %19 = vector.broadcast %18 : vector<1x128xf32> to vector<8x128xf32>
    %20 = arith.select %11, %19, %17 : vector<8x128xi1>, vector<8x128xf32>
    %c0_8 = arith.constant 0 : index
    %c0_9 = arith.constant 0 : index
    %c0_10 = arith.constant 0 : index
    %21 = vector.load %arg4[%c0_8, %c0_9, %c0_10] : memref<1x8x128xf32, #tpu.memory_space<vmem>>, vector<1x8x128xf32>
    %22 = vector.shape_cast %21 : vector<1x8x128xf32> to vector<8x128xf32>
    %23 = vector.shape_cast %20 : vector<8x128xf32> to vector<1x8x128xf32>
    tpu.vector_store %arg4[%c0_8, %c0_9, %c0_10], %23 {strides = array<i32>} : memref<1x8x128xf32, #tpu.memory_space<vmem>>, vector<1x8x128xf32>,
    return
  }
  func.func @transform_0(%arg0: i32) -> (i32, i32) {
    %c0_i32 = arith.constant 0 : i32
    %c0_i32_0 = arith.constant 0 : i32
    return %arg0, %c0_i32 : i32, i32
  }
  func.func @transform_1(%arg0: i32) -> (i32, i32) {
    %c0_i32 = arith.constant 0 : i32
    %c0_i32_0 = arith.constant 0 : i32
    %c0_i32_1 = arith.constant 0 : i32
    return %c0_i32, %c0_i32_0 : i32, i32
  }
  func.func @transform_2(%arg0: i32) -> (i32, i32) {
    %c0_i32 = arith.constant 0 : i32
    %c0_i32_0 = arith.constant 0 : i32
    return %arg0, %c0_i32 : i32, i32
  }
  func.func @transform_3(%arg0: i32) -> (i32, i32, i32) {
    %c0_i32 = arith.constant 0 : i32
    %c0_i32_0 = arith.constant 0 : i32
    %c0_i32_1 = arith.constant 0 : i32
    return %arg0, %c0_i32, %c0_i32_0 : i32, i32, i32
  }
}

</mosaic_0001>

<bundles_post_ra>
// kernel: tpu_custom_call.1
= control target key start
LH: loop header
LB: loop body
LE: loop exit
PB: predicated region body
PF: predicated region fallthrough
CT: control target
= control target key end

     0   :  { %9 = vsyncpa [#allocation3], 0  ;;  %s1412_s0 = inlined_call_operand.vmem [shape: bf16[512,36], index: 0, kind: input, shape index: {}]   ;;  %s1413_s1 = inlined_call_operand.vmem [shape: bf16[36,128], index: 1, kind: input, shape index: {}]   ;;  %s1414_s2 = inlined_call_operand.hbm [shape: f32[512,128], index: 2, kind: output, shape index: {0}]   ;;  %s1415_s3 = inlined_call_operand.hbm [shape: f32[2,8,128], index: 3, kind: output, shape index: {1}]  }
   0x1   :  { %11 = vsyncpa [#allocation3 + $0x1], 0 }
   0x2   :  { %12 = vsyncpa [#allocation5], 0 }
   0x3   :  { %14 = vsyncpa [#allocation5 + $0x1], 0  ;;  %s1102_s12 = smov 0   ;;  %s1104_s13 = smov 0  }
   0x4   :  { %s1106_s14 = smov 0   ;;  %s1108_s15 = smov 0  }
   0x5 LB: > { %s1123_s16 = sadd.s32 4294967295, %s1076_s15   ;;  %s801_s17 = sadd.s32 4294967294, %s1076_s15   ;;  %s1076_s15 = sphi %s1108_s15, %s1421_s15   ;;  %s1072_s14 = sphi %s1106_s14, %s1420_s14   ;;  %s1068_s13 = sphi %s1104_s13, %s1419_s13   ;;  %s1064_s12 = sphi %s1102_s12, %s1418_s12  }
   0x6   : > { %s1127_s18 = sadd.s32 1, %s1076_s15   ;;  %s74_s19 = sadd.s32 1, %s1072_s14 }
   0x7   : > { %s71_s20 = ssub.s32 %s1076_s15, %s1127_s18  ;;  %p84_p0 = scmp.ne.s32.totalorder %s1072_s14, %s1068_s13 }
   0x8   : > { %p72_p1 = scmp.eq.s32.totalorder %s71_s20, 0  ;;  %p85_p2 = scmp.eq.s32.totalorder %s1123_s16, 1 }
   0x9   : > { %p90_p3 = scmp.ne.s32.totalorder %s1068_s13, %s1064_s12  ;;  %p91_p4 = scmp.eq.s32.totalorder %s801_s17, 1 }
   0xa   : > { %s1138_s21 = scalar_select %p72_p1, %s1072_s14, %s74_s19  }
   0xb   : > { %p1140_p5 = por %p85_p2, %p84_p0  ;;  %p1144_p6 = por %p91_p4, %p90_p3 }
   0xc   : > { %p804_p7 = scmp.ge.s32.totalorder %s1076_s15, 1  ;;  %p147_p8 = scmp.lt.s32.totalorder %s1076_s15, 3 }
   0xe   : > { %p148_p9 = pnand %p804_p7, %p147_p8 }
   0xf   : > { %v963_v0 = vld [vmem:[%s1413_s1] sm:$0xff] (!%p148_p9)   ;;  %v964_v1 = vld [vmem:[%s1413_s1 + $0x8] sm:$0xff] (!%p148_p9)   ;;  %s807_s28 = sshll.u32 (!%p148_p9), %s1123_s16, 5  ;;  %v965_v2 = vld [vmem:[%s1413_s1 + $0x10] ss:$0 sps:$4 sm:$0x33] (!%p148_p9)  }
  0x10   : > { %151 = sbr.rel (%p148_p9) target bundleno = 346 (0x15a), region = 28  ;;  %871 = vmatprep.subr.bf16.mxu0 (!%p148_p9), %v963_v0  ;;  %p177_p10 = scmp.lt.s32.totalorder (!%p148_p9), %s807_s28, 63  ;;  %909 = vmatprep.subr.bf16.mxu1 (!%p148_p9), %v963_v0  ;;  %vm365_vm0 = vcmask (!%p148_p9), 1041408   ;;  %vm316_vm1 = vcmask (!%p148_p9), 293888  }
  0x11   : > { %872 = vmatpush3.bf16.msra.mxu0 (!%p148_p9), %v963_v0  ;;  %912 = vmatpush3.bf16.msra.mxu1 (!%p148_p9), %v963_v0  ;;  %v367_v3 = vsel (!%p148_p9), %vm365_vm0, %v965_v2, 0  ;;  %s1198_s8 = sand.u32 (!%p148_p9), 1, %s1068_s13   ;;  %s851_s11 = sshll.u32 (!%p148_p9), %s1123_s16, 12 }
  0x12   : > { %873 = vmatprep.subr.bf16.mxu0 (!%p148_p9), %v964_v1  ;;  %910 = vmatprep.subr.bf16.mxu1 (!%p148_p9), %v964_v1  ;;  %s805_s9 = sshll.u32 (!%p148_p9), %s1198_s8, 8  ;;  %s1278_s24 = scalar_lea.hbm (!%p148_p9), %s1414_s2, %s851_s11 }
  0x13   : > { %s1201_s10 = scalar_lea.vmem (!%p148_p9), [#allocation2], %s805_s9  ;;  %s676_s25 = scalar_lea.sflag (!%p148_p9), [#allocation3], %s1198_s8 }
  0x14   : > { %s694_s17 = sshll.u32 (!%p148_p9), %s1201_s10, 4  ;;  %s1078_s27 = smov (!%p148_p9), [#allocation2]   ;;  %s1280_s17 = int_to_ptr.vmem [resolvable:$true] %s694_s17 }
  0x15   : > { %874 = vmatpush3.bf16.msra.mxu0 (!%p148_p9), %v964_v1  ;;  %913 = vmatpush3.bf16.msra.mxu1 (!%p148_p9), %v964_v1  ;;  %s982_s26 = scalar_lea.vmem (!%p148_p9), %s1280_s17, 4096 }
  0x16   : > { %915 = vmatprep.subr.msk.bf16.mxu0 (!%p148_p9), %vm365_vm0, %v965_v2  ;;  %916 = vmatprep.subr.msk.bf16.mxu1 (!%p148_p9), %vm365_vm0, %v965_v2  ;;  %p983_p11 = scmp.ne.s32.totalorder (!%p148_p9), %s1280_s17, %s982_s26 }
  0x17   : > { %s1423_s28 = smov (!%p177_p10, %s807_s28), 63 }
  0x18   : > { %s808_s4 = sshll.u32 %s1423_s28, 2  ;;  %p984_p12 = pnand %p983_p11, %p1140_p5 }
  0x19   : > { %s1163_s7 = scalar_lea.vmem %s1412_s0, %s808_s4  ;;  %876 = vmatpush3.bf16.msra.mxu0 %v367_v3  ;;  %914 = vmatpush3.bf16.msra.mxu1 %v367_v3  ;;  %s986_s28 = sshll.u32 %s1078_s27, 4  ;;  %s987_s28 = int_to_ptr.vmem [resolvable:$false] %s986_s28 }
  0x1a   : > { %v966_v4 = vld [vmem:[%s1163_s7] sm:$0xff]   ;;  %v967_v5 = vld [vmem:[%s1163_s7 + $0x8] sm:$0xff]   ;;  %v968_v6 = vld [vmem:[%s1163_s7 + $0x10] sm:$0xff]   ;;  %p985_p13 = pneg %p984_p12  ;;  %s988_s29 = scalar_lea.vmem %s987_s28, 8192 }
  0x1b   : > { %877 = vmatprep.mubr.msk.bf16.mxu0 %vm316_vm1, %v966_v4  ;;  %v969_v7 = vld [vmem:[%s1163_s7 + $0x18] sm:$0xff]   ;;  %v974_v8 = vld [vmem:[%s1163_s7 + $0x40] sm:$0xff]   ;;  %v975_v9 = vld [vmem:[%s1163_s7 + $0x48] sm:$0xff]   ;;  %p989_p0 = scmp.lt.s32.totalorder %s1280_s17, %s987_s28  ;;  %p990_p1 = scmp.lt.s32.totalorder %s988_s29, %s982_s26 }
  0x1c   : > { %878 = vmatmul.mubr.msk.bf16.vlgmr.msra.gmra.mrb[0].mxu0 %vm316_vm1, %v967_v5  ;;  %893 = vmatprep.mubr.msk.bf16.mxu1 %vm316_vm1, %v974_v8  ;;  %v976_v10 = vld [vmem:[%s1163_s7 + $0x50] sm:$0xff]   ;;  %v970_v11 = vld [vmem:[%s1163_s7 + $0x20] sm:$0xff]   ;;  %v977_v12 = vld [vmem:[%s1163_s7 + $0x58] sm:$0xff]  }
  0x1d   : > { %881 = vmatprep.mubr.msk.bf16.mxu0 %vm316_vm1, %v968_v6  ;;  %894 = vmatmul.mubr.msk.bf16.vlgmr.msra.gmra.mrb[0].mxu1 %vm316_vm1, %v975_v9  ;;  %v978_v13 = vld [vmem:[%s1163_s7 + $0x60] sm:$0xff]   ;;  %v971_v14 = vld [vmem:[%s1163_s7 + $0x28] sm:$0xff]   ;;  %v972_v15 = vld [vmem:[%s1163_s7 + $0x30] sm:$0xff]   ;;  %p991_p2 = por %p990_p1, %p989_p0 }
  0x1e   : > { %897 = vmatprep.mubr.msk.bf16.mxu1 %vm316_vm1, %v976_v10  ;;  %v979_v16 = vld [vmem:[%s1163_s7 + $0x68] sm:$0xff]   ;;  %v980_v17 = vld [vmem:[%s1163_s7 + $0x70] sm:$0xff]   ;;  %v973_v18 = vld [vmem:[%s1163_s7 + $0x38] sm:$0xff]  }
  0x1f   : > { %v981_v19 = vld [vmem:[%s1163_s7 + $0x78] sm:$0xff]   ;;  %p992_p3 = pnand %p991_p2, %p985_p13 }
  0x24   : > { %882 = vmatmul.mubr.msk.bf16.gmra.mrb[4].mxu0 %vm316_vm1, %v969_v7 }
  0x25   : > { %885 = vmatprep.mubr.msk.bf16.mxu0 %vm316_vm1, %v970_v11  ;;  %898 = vmatmul.mubr.msk.bf16.gmra.mrb[4].mxu1 %vm316_vm1, %v977_v12 }
  0x26   : > { %901 = vmatprep.mubr.msk.bf16.mxu1 %vm316_vm1, %v978_v13 }
  0x2c   : > { %886 = vmatmul.mubr.msk.bf16.gmra.mrb[8].mxu0 %vm316_vm1, %v971_v14 }
  0x2d   : > { %889 = vmatprep.mubr.msk.bf16.mxu0 %vm316_vm1, %v972_v15  ;;  %902 = vmatmul.mubr.msk.bf16.gmra.mrb[8].mxu1 %vm316_vm1, %v979_v16 }
  0x2e   : > { %905 = vmatprep.mubr.msk.bf16.mxu1 %vm316_vm1, %v980_v17 }
  0x34   : > { %890 = vmatmul.mubr.msk.bf16.gmra.mrb[12].mxu0 %vm316_vm1, %v973_v18 }
  0x35   : > { %906 = vmatmul.mubr.msk.bf16.gmra.mrb[12].mxu1 %vm316_vm1, %v981_v19 }
  0xef   : > { %v879_v20 = vpop.f32.mrb[0].mxu0 }
  0xf0   : > { %532 = vst [vmem:[%s1201_s10 + $0x10] sm:$0xff] %v879_v20  ;;  %v403_v21 = vpop.f32.mrb[1].mxu0  ;;  %v1207_v27 = vpop.f32.mrb[0].mxu1  ;;  %v601_v28 = vmul.f32 %v879_v20, %v879_v20 }
  0xf1   : > { %530 = vst [vmem:[%s1201_s10] sm:$0xff] %v403_v21  ;;  %v880_v22 = vpop.f32.mrb[2].mxu0  ;;  %v599_v24 = vmul.f32 %v403_v21, %v403_v21  ;;  %548 = vst [vmem:[%s1201_s10 + $0x90] sm:$0xff] %v1207_v27  ;;  %v1211_v31 = vpop.f32.mrb[1].mxu1 }
  0xf2   : > { %533 = vst [vmem:[%s1201_s10 + $0x18] sm:$0xff] %v880_v22  ;;  %v406_v23 = vpop.f32.mrb[3].mxu0  ;;  %546 = vst [vmem:[%s1201_s10 + $0x80] sm:$0xff] %v1211_v31  ;;  %v1215_v32 = vpop.f32.mrb[2].mxu1  ;;  %v602_v33 = vmul.f32 %v880_v22, %v880_v22 }
  0xf3   : > { %531 = vst [vmem:[%s1201_s10 + $0x8] sm:$0xff] %v406_v23  ;;  %v562_v25 = vadd.f32 %v406_v23, %v403_v21  ;;  %v600_v26 = vmul.f32 %v406_v23, %v406_v23  ;;  %549 = vst [vmem:[%s1201_s10 + $0x98] sm:$0xff] %v1215_v32  ;;  %v1219_v37 = vpop.f32.mrb[3].mxu1 }
  0xf4   : > { %547 = vst [vmem:[%s1201_s10 + $0x88] sm:$0xff] %v1219_v37 }
  0xf5   : > { %v563_v29 = vadd.f32 %v879_v20, %v562_v25  ;;  %v631_v30 = vadd.f32 %v600_v26, %v599_v24 }
  0xf7   : > { %v632_v34 = vadd.f32 %v631_v30, %v601_v28  ;;  %v883_v35 = vpop.f32.mrb[4].mxu0  ;;  %v564_v36 = vadd.f32 %v880_v22, %v563_v29 }
  0xf8   : > { %536 = vst [vmem:[%s1201_s10 + $0x30] sm:$0xff] %v883_v35  ;;  %v419_v38 = vpop.f32.mrb[5].mxu0  ;;  %v1227_v47 = vpop.f32.mrb[4].mxu1  ;;  %v605_v48 = vmul.f32 %v883_v35, %v883_v35 }
  0xf9   : > { %534 = vst [vmem:[%s1201_s10 + $0x20] sm:$0xff] %v419_v38  ;;  %v565_v39 = vadd.f32 %v564_v36, %v419_v38  ;;  %v603_v40 = vmul.f32 %v419_v38, %v419_v38  ;;  %v633_v41 = vadd.f32 %v632_v34, %v602_v33  ;;  %v884_v42 = vpop.f32.mrb[6].mxu0  ;;  %552 = vst [vmem:[%s1201_s10 + $0xb0] sm:$0xff] %v1227_v47  ;;  %v1231_v51 = vpop.f32.mrb[5].mxu1 }
  0xfa   : > { %537 = vst [vmem:[%s1201_s10 + $0x38] sm:$0xff] %v884_v42  ;;  %v422_v43 = vpop.f32.mrb[7].mxu0  ;;  %550 = vst [vmem:[%s1201_s10 + $0xa0] sm:$0xff] %v1231_v51  ;;  %v1235_v52 = vpop.f32.mrb[6].mxu1  ;;  %v606_v53 = vmul.f32 %v884_v42, %v884_v42 }
  0xfb   : > { %v634_v44 = vadd.f32 %v633_v41, %v603_v40  ;;  %535 = vst [vmem:[%s1201_s10 + $0x28] sm:$0xff] %v422_v43  ;;  %v566_v45 = vadd.f32 %v565_v39, %v422_v43  ;;  %v604_v46 = vmul.f32 %v422_v43, %v422_v43  ;;  %553 = vst [vmem:[%s1201_s10 + $0xb8] sm:$0xff] %v1235_v52  ;;  %v1239_v57 = vpop.f32.mrb[7].mxu1 }
  0xfc   : > { %551 = vst [vmem:[%s1201_s10 + $0xa8] sm:$0xff] %v1239_v57 }
  0xfd   : > { %v567_v49 = vadd.f32 %v883_v35, %v566_v45  ;;  %v635_v50 = vadd.f32 %v634_v44, %v604_v46  ;;  %v615_v35 = vmul.f32 %v1211_v31, %v1211_v31 }
  0xff   : > { %v636_v54 = vadd.f32 %v635_v50, %v605_v48  ;;  %v887_v55 = vpop.f32.mrb[8].mxu0  ;;  %v568_v56 = vadd.f32 %v884_v42, %v567_v49 }
 0x100   : > { %540 = vst [vmem:[%s1201_s10 + $0x50] sm:$0xff] %v887_v55  ;;  %v435_v58 = vpop.f32.mrb[9].mxu0  ;;  %v1247_v3 = vpop.f32.mrb[8].mxu1  ;;  %v609_v4 = vmul.f32 %v887_v55, %v887_v55 }
 0x101   : > { %538 = vst [vmem:[%s1201_s10 + $0x40] sm:$0xff] %v435_v58  ;;  %v569_v59 = vadd.f32 %v568_v56, %v435_v58  ;;  %v607_v60 = vmul.f32 %v435_v58, %v435_v58  ;;  %v637_v61 = vadd.f32 %v636_v54, %v606_v53  ;;  %v888_v62 = vpop.f32.mrb[10].mxu0  ;;  %556 = vst [vmem:[%s1201_s10 + $0xd0] sm:$0xff] %v1247_v3  ;;  %v1251_v7 = vpop.f32.mrb[9].mxu1 }
 0x102   : > { %541 = vst [vmem:[%s1201_s10 + $0x58] sm:$0xff] %v888_v62  ;;  %v438_v63 = vpop.f32.mrb[11].mxu0  ;;  %554 = vst [vmem:[%s1201_s10 + $0xc0] sm:$0xff] %v1251_v7  ;;  %v1255_v8 = vpop.f32.mrb[10].mxu1  ;;  %v610_v9 = vmul.f32 %v888_v62, %v888_v62 }
 0x103   : > { %v638_v0 = vadd.f32 %v637_v61, %v607_v60  ;;  %539 = vst [vmem:[%s1201_s10 + $0x48] sm:$0xff] %v438_v63  ;;  %v570_v1 = vadd.f32 %v569_v59, %v438_v63  ;;  %v608_v2 = vmul.f32 %v438_v63, %v438_v63  ;;  %557 = vst [vmem:[%s1201_s10 + $0xd8] sm:$0xff] %v1255_v8  ;;  %v1259_v13 = vpop.f32.mrb[11].mxu1 }
 0x104   : > { %555 = vst [vmem:[%s1201_s10 + $0xc8] sm:$0xff] %v1259_v13 }
 0x105   : > { %v571_v5 = vadd.f32 %v887_v55, %v570_v1  ;;  %v639_v6 = vadd.f32 %v638_v0, %v608_v2 }
 0x107   : > { %v640_v10 = vadd.f32 %v639_v6, %v609_v4  ;;  %v891_v11 = vpop.f32.mrb[12].mxu0  ;;  %v572_v12 = vadd.f32 %v888_v62, %v571_v5 }
 0x108   : > { %544 = vst [vmem:[%s1201_s10 + $0x70] sm:$0xff] %v891_v11  ;;  %v451_v14 = vpop.f32.mrb[13].mxu0  ;;  %v1269_v23 = vpop.f32.mrb[12].mxu1  ;;  %v613_v24 = vmul.f32 %v891_v11, %v891_v11 }
 0x109   : > { %542 = vst [vmem:[%s1201_s10 + $0x60] sm:$0xff] %v451_v14  ;;  %v573_v15 = vadd.f32 %v572_v12, %v451_v14  ;;  %v611_v16 = vmul.f32 %v451_v14, %v451_v14  ;;  %v641_v17 = vadd.f32 %v640_v10, %v610_v9  ;;  %v892_v18 = vpop.f32.mrb[14].mxu0  ;;  %560 = vst [vmem:[%s1201_s10 + $0xf0] sm:$0xff] %v1269_v23  ;;  %v1273_v28 = vpop.f32.mrb[13].mxu1 }
 0x10a   : > { %545 = vst [vmem:[%s1201_s10 + $0x78] sm:$0xff] %v892_v18  ;;  %v454_v19 = vpop.f32.mrb[15].mxu0  ;;  %558 = vst [vmem:[%s1201_s10 + $0xe0] sm:$0xff] %v1273_v28  ;;  %v1284_v29 = vpop.f32.mrb[14].mxu1  ;;  %v614_v30 = vmul.f32 %v892_v18, %v892_v18 }
 0x10b   : > { %v642_v20 = vadd.f32 %v641_v17, %v611_v16  ;;  %543 = vst [vmem:[%s1201_s10 + $0x68] sm:$0xff] %v454_v19  ;;  %v574_v21 = vadd.f32 %v573_v15, %v454_v19  ;;  %v612_v22 = vmul.f32 %v454_v19, %v454_v19  ;;  %561 = vst [vmem:[%s1201_s10 + $0xf8] sm:$0xff] %v1284_v29  ;;  %v1290_v36 = vpop.f32.mrb[15].mxu1 }
 0x10c   : > { %559 = vst [vmem:[%s1201_s10 + $0xe8] sm:$0xff] %v1290_v36 }
 0x10d   : > { %v575_v25 = vadd.f32 %v891_v11, %v574_v21  ;;  %v643_v26 = vadd.f32 %v642_v20, %v612_v22 }
 0x10f   : > { %v644_v33 = vadd.f32 %v643_v26, %v613_v24  ;;  %v576_v34 = vadd.f32 %v892_v18, %v575_v25 }
 0x111   : > { %v577_v38 = vadd.f32 %v576_v34, %v1211_v31  ;;  %v645_v39 = vadd.f32 %v644_v33, %v614_v30 }
 0x112   : > { %995 = shalt.err (!%p992_p3)
}
 0x113   : > { %s996_s30 = scalar_lea.hbm %s1278_s24, 4096  ;;  %s1000_s6 = scalar_lea.hbm %s1414_s2, 8192 }
 0x114   : > { %p997_p4 = scmp.ne.s32.totalorder %s1278_s24, %s996_s30  ;;  %p1001_p9 = scmp.lt.u32.totalorder %s1278_s24, %s1414_s2 }
 0x115   : > { %p1002_p10 = scmp.lt.u32.totalorder %s1000_s6, %s996_s30  ;;  %p1004_p12 = scmp.lt.u32.totalorder %s996_s30, %s1278_s24 }
 0x116   : > { %p998_p7 = pnand %p997_p4, %p1140_p5 }
 0x117   : > { %p1003_p11 = por %p1002_p10, %p1001_p9 }
 0x118   : > { %p999_p8 = pneg %p998_p7 }
 0x119   : > { %p1005_p13 = por %p1004_p12, %p1003_p11 }
 0x11b   : > { %p1006_p0 = pnand %p1005_p13, %p999_p8 }
 0x11d   : > { %1009 = shalt.err (!%p1006_p0)
}
 0x11e   : > { %s1079_s10 = smov 128   ;;  %s1080_s11 = smov 8   ;;  %v646_v31 = vadd.f32 %v645_v39, %v615_v35  ;;  %v578_v40 = vadd.f32 %v577_v38, %v1219_v37  ;;  %v616_v41 = vmul.f32 %v1219_v37, %v1219_v37  ;;  %v617_v42 = vmul.f32 %v1207_v27, %v1207_v27 }
 0x11f   : > { %917 = dma.vmem_to_hbm [thread:$0]  (%p1140_p5), %s1280_s17, 4096, %s1278_s24, %s676_s25, %s1079_s10, %s1079_s10, %s1080_s11   ;;  %v618_v45 = vmul.f32 %v1215_v32, %v1215_v32  ;;  %v619_v49 = vmul.f32 %v1231_v51, %v1231_v51  ;;  %v620_v55 = vmul.f32 %v1239_v57, %v1239_v57  ;;  %v624_v0 = vmul.f32 %v1259_v13, %v1259_v13 }
 0x120   : > { %v579_v43 = vadd.f32 %v1207_v27, %v578_v40  ;;  %v647_v44 = vadd.f32 %v646_v31, %v616_v41  ;;  %v621_v27 = vmul.f32 %v1227_v47, %v1227_v47  ;;  %v627_v6 = vmul.f32 %v1273_v28, %v1273_v28  ;;  %s806_s17 = sshll.u32 %s1198_s8, 3  ;;  %s848_s19 = sshll.u32 %s1123_s16, 7 }
 0x121   : > { %v629_v12 = vmul.f32 %v1269_v23, %v1269_v23  ;;  %v668_v21 = vlaneseq  ;;  %s175_s20 = scalar_lea.vmem [#allocation4], %s806_s17  ;;  %s1369_s27 = scalar_lea.hbm %s1415_s3, %s848_s19 }
 0x122   : > { %v648_v46 = vadd.f32 %v647_v44, %v617_v42  ;;  %v580_v48 = vadd.f32 %v1215_v32, %v579_v43  ;;  %v622_v32 = vmul.f32 %v1235_v52, %v1235_v52  ;;  %s710_s24 = sshll.u32 %s175_s20, 4  ;;  %s681_s28 = scalar_lea.sflag [#allocation5], %s1198_s8  ;;  %s1371_s24 = int_to_ptr.vmem [resolvable:$true] %s710_s24 }
 0x123   : > { %s1010_s16 = scalar_lea.vmem %s1371_s24, 128  ;;  %s1081_s29 = smov [#allocation4]  }
 0x124   : > { %v581_v50 = vadd.f32 %v580_v48, %v1231_v51  ;;  %v649_v53 = vadd.f32 %v648_v46, %v618_v45  ;;  %v623_v51 = vmul.f32 %v1251_v7, %v1251_v7  ;;  %p1011_p1 = scmp.ne.s32.totalorder %s1371_s24, %s1010_s16  ;;  %s1014_s30 = sshll.u32 %s1081_s29, 4  ;;  %s1015_s30 = int_to_ptr.vmem [resolvable:$false] %s1014_s30 }
 0x125   : > { %s1016_s4 = scalar_lea.vmem %s1015_s30, 256  ;;  %p1017_p4 = scmp.lt.s32.totalorder %s1371_s24, %s1015_s30 }
 0x126   : > { %v650_v54 = vadd.f32 %v649_v53, %v619_v49  ;;  %v582_v37 = vadd.f32 %v581_v50, %v1239_v57  ;;  %p1012_p2 = pnand %p1011_p1, %p1140_p5  ;;  %p1018_p7 = scmp.lt.s32.totalorder %s1016_s4, %s1010_s16 }
 0x128   : > { %v583_v56 = vadd.f32 %v1227_v47, %v582_v37  ;;  %v651_v58 = vadd.f32 %v650_v54, %v620_v55  ;;  %v625_v47 = vmul.f32 %v1247_v3, %v1247_v3  ;;  %p1013_p3 = pneg %p1012_p2  ;;  %p1019_p8 = por %p1018_p7, %p1017_p4 }
 0x12a   : > { %v652_v59 = vadd.f32 %v651_v58, %v621_v27  ;;  %v584_v60 = vadd.f32 %v1235_v52, %v583_v56  ;;  %v626_v52 = vmul.f32 %v1255_v8, %v1255_v8  ;;  %p1020_p9 = pnand %p1019_p8, %p1013_p3 }
 0x12c   : > { %v585_v61 = vadd.f32 %v584_v60, %v1251_v7  ;;  %v653_v62 = vadd.f32 %v652_v59, %v622_v32 }
 0x12e   : > { %v654_v63 = vadd.f32 %v653_v62, %v623_v51  ;;  %v586_v57 = vadd.f32 %v585_v61, %v1259_v13 }
 0x130   : > { %v587_v1 = vadd.f32 %v1247_v3, %v586_v57  ;;  %v655_v2 = vadd.f32 %v654_v63, %v624_v0  ;;  %v628_v3 = vmul.f32 %v1290_v36, %v1290_v36 }
 0x132   : > { %v656_v4 = vadd.f32 %v655_v2, %v625_v47  ;;  %v588_v5 = vadd.f32 %v1255_v8, %v587_v1  ;;  %v630_v8 = vmul.f32 %v1284_v29, %v1284_v29 }
 0x134   : > { %v589_v7 = vadd.f32 %v588_v5, %v1273_v28  ;;  %v657_v9 = vadd.f32 %v656_v4, %v626_v52  ;;  %v669_v28 = vshrl.u32 %v668_v21, 7 }
 0x136   : > { %v658_v10 = vadd.f32 %v657_v9, %v627_v6  ;;  %v590_v11 = vadd.f32 %v589_v7, %v1290_v36  ;;  %vm671_vm2 = vcmp.eq.s32.totalorder %v669_v28, 1  ;;  %vm670_vm3 = vcmp.eq.s32.totalorder %v669_v28, 0 }
 0x138   : > { %v591_v13 = vadd.f32 %v1269_v23, %v590_v11  ;;  %v659_v14 = vadd.f32 %v658_v10, %v628_v3 }
 0x13a   : > { %v592_v15 = vadd.f32 %v1284_v29, %v591_v13  ;;  %v660_v16 = vadd.f32 %v659_v14, %v629_v12 }
 0x13c   : > { %v593_v17 = vrot.slane %v592_v15, 4  ;;  %v661_v18 = vadd.f32 %v660_v16, %v630_v8 }
 0x13e   : > { %v594_v19 = vadd.f32 %v593_v17, %v592_v15  ;;  %v662_v20 = vrot.slane %v661_v18, 4 }
 0x140   : > { %v595_v22 = vrot.slane %v594_v19, 2  ;;  %v663_v24 = vadd.f32 %v662_v20, %v661_v18 }
 0x142   : > { %v596_v25 = vadd.f32 %v595_v22, %v594_v19  ;;  %v664_v26 = vrot.slane %v663_v24, 2 }
 0x144   : > { %v665_v23 = vadd.f32 %v664_v26, %v663_v24  ;;  %v597_v30 = vrot.slane %v596_v25, 1 }
 0x146   : > { %v666_v33 = vrot.slane %v665_v23, 1  ;;  %v598_v34 = vadd.f32 %v597_v30, %v596_v25 }
 0x148   : > { %v667_v29 = vadd.f32 %v666_v33, %v665_v23 }
 0x14a   : > { %v672_v35 = vsel %vm671_vm2, %v667_v29, 0.0 }
 0x14b   : > { %v673_v36 = vsel %vm670_vm3, %v598_v34, %v672_v35 }
 0x14c   : > { %674 = vst [vmem:[%s175_s20] sm:$0xff] %v673_v36 }
 0x14d   : > { %1023 = shalt.err (!%p1020_p9)
}
 0x14e   : > { %s1024_s8 = scalar_lea.hbm %s1369_s27, 128  ;;  %s1028_s7 = scalar_lea.hbm %s1415_s3, 256 }
 0x14f   : > { %p1025_p10 = scmp.ne.s32.totalorder %s1369_s27, %s1024_s8  ;;  %p1029_p13 = scmp.lt.u32.totalorder %s1369_s27, %s1415_s3 }
 0x150   : > { %p1030_p0 = scmp.lt.u32.totalorder %s1028_s7, %s1024_s8  ;;  %p1032_p2 = scmp.lt.u32.totalorder %s1024_s8, %s1369_s27 }
 0x151   : > { %p1026_p11 = pnand %p1025_p10, %p1140_p5 }
 0x152   : > { %p1031_p1 = por %p1030_p0, %p1029_p13 }
 0x153   : > { %p1027_p12 = pneg %p1026_p11 }
 0x154   : > { %p1033_p3 = por %p1032_p2, %p1031_p1 }
 0x156   : > { %p1034_p4 = pnand %p1033_p3, %p1027_p12 }
 0x158   : > { %1037 = shalt.err (!%p1034_p4)
}
 0x159   : > { %918 = dma.vmem_to_hbm [thread:$0]  (%p1140_p5), %s1371_s24, 128, %s1369_s27, %s681_s28  }
 0x15a PF: > { %p928_p7 = scmp.ge.s32.totalorder %s1076_s15, 2  ;;  %s722_s11 = sand.u32 1, %s1064_s12  }
 0x15b   : > { %s723_s17 = scalar_lea.sflag [#allocation3], %s722_s11 }
 0x15c   : > { %p922_p8 = pnand %p928_p7, %p1144_p6 }
 0x15e   : > { %1055 = dma.done.wait (!%p922_p8), %s723_s17, 4096  }
 0x15f   : > { %1057 = vsyncadd (!%p922_p8), %s723_s17, 4294963200  ;;  %s732_s19 = scalar_lea.sflag [#allocation5], %s722_s11 }
 0x160   : > { %1059 = dma.done.wait (!%p922_p8), %s732_s19, 128  }
 0x161   : > { %1061 = vsyncadd (!%p922_p8), %s732_s19, 4294967168  ;;  %p17_p5 = scmp.ge.s32.totalorder %s1127_s18, 4   ;;  %s1418_s12 = smov %s1068_s13 }
 0x162   : > { %s1419_s13 = smov %s1072_s14  ;;  %s1420_s14 = smov %s1138_s21 }
 0x163   : > { %s1421_s15 = smov %s1127_s18  ;;  %19 = sbr.rel (!%p17_p5) target bundleno = 5 (0x5), region = 80 }
 0x16a   :  { %737 = vsyncpa [#allocation3], 1 }
 0x16b   :  { %739 = vsyncpa [#allocation3 + $0x1], 1 }
 0x16c   :  { %740 = vsyncpa [#allocation5], 1 }
 0x16d   :  { %742 = vsyncpa [#allocation5 + $0x1], 1 }

</bundles_post_ra>
